<compile_context>
chip_gen: v5e
topology: v5e:2x2
jax: 0.10.0
libtpu: 0.0.40
codegen_flags: <defaults>
</compile_context>

<pallas_src>
import jax
import jax.numpy as jnp
from jax import lax
from jax.experimental import pallas as pl
from jax.experimental.pallas import tpu as pltpu

H = 6              # true hidden size (forced by nn.Linear(12, 6))
HP = 8             # per-direction hidden padded to an aligned 8-row sublane block
DW = 2 * HP        # double-wide hidden rows [forward | reverse] = 16
T = 3              # sequence length (forced by the torch.stack at the end of forward())
NZ = 7 * DW        # live pre-activation rows: step-0 {i,g,o} (3*DW) + step-1 {i,f,g,o} (4*DW)
NOUT = 3 * HP      # fused output rows [head | mid | tail] = 24


# --------------------------------------------------------------------------------------
# Pallas kernel (batch on lanes for all activations; x arrives in natural layout)
# --------------------------------------------------------------------------------------
def _lstm_rnn_kernel(x_ref, w_z_ref, b_z_ref, w_hh_ref, w_out_ref, b_out_ref, out_ref):
    """Shapes (bt = batch tile; on sublanes for x, on lanes for everything else):
         x_ref    : (bt, T*F)        w_z_ref  : (NZ, T*F)      b_z_ref  : (NZ, 1)
         w_hh_ref : (4*DW, DW)       w_out_ref: (2*NOUT, DW)   b_out_ref: (NOUT, 1)
         out_ref  : (NOUT, bt)
    """
    # All live input projections (fwd/rev step 0, fwd+rev step 1) + folded gate biases
    # in one MXU op that contracts the feature (lane) axis of both operands:
    #   z[r, b] = sum_f w_z[r, f] * x[b, f]
    # which lands the activations batch-on-lanes with no transpose anywhere.
    z = lax.dot_general(
        w_z_ref[...], x_ref[...],
        dimension_numbers=(((1,), (1,)), ((), ())),
        preferred_element_type=jnp.float32) + b_z_ref[...]            # (NZ, bt)

    def sigmoid(v):                     # one EUP tanh instead of exp + divide
        return 0.5 * jnp.tanh(0.5 * v) + 0.5

    # Step 0 of both directions (rows = [fwd | rev]); c_prev == 0, so the forget gate is
    # dead and was never packed/projected. Forward sees x[:,0,:], reverse sees x[:,2,:]
    # (the reverse LSTM runs over torch.flip(x, [1])).
    i0 = sigmoid(z[0 * DW:1 * DW])
    g0 = jnp.tanh(z[1 * DW:2 * DW])
    o0 = sigmoid(z[2 * DW:3 * DW])
    c0 = i0 * g0
    h0 = o0 * jnp.tanh(c0)                                            # [h_f0 | h_r0]

    # Step 1 of both directions (both see x[:,1,:]): ONE block-diagonal recurrent matmul
    # plus one double-wide cell. Step 2 of each direction never reaches the module
    # output and is skipped.
    g1 = z[3 * DW:7 * DW] + jnp.dot(w_hh_ref[...], h0,
                                    preferred_element_type=jnp.float32)
    i1 = sigmoid(g1[0 * DW:1 * DW])
    f1 = sigmoid(g1[1 * DW:2 * DW])
    gg = jnp.tanh(g1[2 * DW:3 * DW])
    o1 = sigmoid(g1[3 * DW:4 * DW])
    c1 = f1 * c0 + i1 * gg
    h1 = o1 * jnp.tanh(c1)                                            # [h_f1 | h_r1]

    # Fused [head | mid | tail] heads: two partial dots against the h0 / h1 column
    # blocks (no ones-row, no sublane concat copy), bias added after, one lane-dense
    # store of the whole output tile.
    w_out = w_out_ref[...]
    pre = (jnp.dot(w_out[0:NOUT], h0, preferred_element_type=jnp.float32)
           + jnp.dot(w_out[NOUT:2 * NOUT], h1, preferred_element_type=jnp.float32)
           + b_out_ref[...])
    out_ref[...] = sigmoid(pre)                                       # (NOUT, bt)


# --------------------------------------------------------------------------------------
# Wrapper / glue
# --------------------------------------------------------------------------------------
def _pick_block_b(batch):
    """Batch tile (lane) size: multiple of 128; aims for >=4 grid steps once the batch
    is big enough (two v7x TensorCores + pipelining) with tiles in [256, 2048] lanes
    (per-step overhead amortized on v5e/v6e; VMEM is never the constraint here)."""
    b128 = -(-batch // 128) * 128
    if b128 <= 256:
        return b128
    bt = -(-(b128 // 4) // 128) * 128
    return int(min(max(bt, 256), 2048))


def lstm_rnn_forward_slab(x, packed, *, block_b=None):
    """Returns the lane-dense (NOUT, B) output slab (rows: head 0:8 | mid 8:16 |
    tail 16:24, real width 6 each). Consumers that accept this layout avoid any
    output-side transpose; `lstm_rnn_forward` converts it to the PyTorch (B,3,6)."""
    w_z, b_z, w_hh, w_out, b_out = packed
    B, t, F = x.shape
    assert t == T, "LstmRNN only type-checks for seq_len == 3"
    assert w_z.shape == (NZ, T * F)

    # Free reshape (no HBM pass): batch stays major, the 3*F features land on lanes.
    x_flat = x.astype(jnp.float32).reshape(B, T * F)

    bt = _pick_block_b(B) if block_b is None else block_b
    assert bt % 128 == 0
    grid_b = pl.cdiv(B, bt)
    b_pad = grid_b * bt
    if b_pad != B:                # no-op whenever B is already a multiple of the tile
        x_flat = jnp.pad(x_flat, ((0, b_pad - B), (0, 0)))

    out = pl.pallas_call(
        _lstm_rnn_kernel,
        out_shape=jax.ShapeDtypeStruct((NOUT, b_pad), jnp.float32),
        grid=(grid_b,),
        in_specs=[
            pl.BlockSpec((bt, T * F), lambda i: (i, 0)),     # x batch tile, natural layout
            pl.BlockSpec((NZ, T * F), lambda i: (0, 0)),     # fused input-proj weights
            pl.BlockSpec((NZ, 1), lambda i: (0, 0)),         # folded gate biases
            pl.BlockSpec((4 * DW, DW), lambda i: (0, 0)),    # block-diag recurrent weights
            pl.BlockSpec((2 * NOUT, DW), lambda i: (0, 0)),  # fused output heads
            pl.BlockSpec((NOUT, 1), lambda i: (0, 0)),       # output biases
        ],
        out_specs=pl.BlockSpec((NOUT, bt), lambda i: (0, i)),
        compiler_params=pltpu.CompilerParams(
            dimension_semantics=("parallel",)),
    )(x_flat, w_z, b_z, w_hh, w_out, b_out)
    return out[:, :B]


def lstm_rnn_forward(x, packed, *, block_b=None):
    """PyTorch-shaped (B, 3, 6) output (thin view on the lane-dense slab)."""
    slab = lstm_rnn_forward_slab(x, packed, block_b=block_b)
    B = x.shape[0]
    return slab.T.reshape(B, 3, HP)[:, :, :H]


def init_torch_params(key, input_size):
    """Deterministic params with PyTorch shapes (uniform +-1/sqrt(fan))."""
    ks = jax.random.split(key, 14)

    def u(k, shape, bound):
        return jax.random.uniform(k, shape, jnp.float32, -bound, bound)

    kH = 1.0 / float(H) ** 0.5
    k12 = 1.0 / 12.0 ** 0.5
    k6 = 1.0 / 6.0 ** 0.5
    return dict(
        wih_f=u(ks[0], (4 * H, input_size), kH), whh_f=u(ks[1], (4 * H, H), kH),
        bih_f=u(ks[2], (4 * H,), kH), bhh_f=u(ks[3], (4 * H,), kH),
        wih_r=u(ks[4], (4 * H, input_size), kH), whh_r=u(ks[5], (4 * H, H), kH),
        bih_r=u(ks[6], (4 * H,), kH), bhh_r=u(ks[7], (4 * H,), kH),
        wfc=u(ks[8], (6, 12), k12), bfc=u(ks[9], (6,), k12),
        whead=u(ks[10], (6, 6), k6), bhead=u(ks[11], (6,), k6),
        wtail=u(ks[12], (6, 6), k6), btail=u(ks[13], (6,), k6),
    )


def pack_params(p, input_size):
    """Pack the 13 PyTorch params into 5 kernel operands:
         w_z   (NZ, 3F)   : live input projections, gate-major across both directions;
                            fwd step-0 rows read cols 0:F (x[:,0,:]), rev step-0 rows
                            read cols 2F:3F (x[:,2,:]), step-1 rows read cols F:2F.
         b_z   (NZ, 1)    : folded b_ih + b_hh for the same rows.
         w_hh  (4*DW, DW) : block-diagonal recurrent weights for the merged step 1.
         w_out (2*NOUT,DW): fused [head|mid|tail] heads; rows 0:NOUT multiply h0,
                            rows NOUT:2*NOUT multiply h1.
         b_out (NOUT, 1)  : head / mid / tail biases.
       Hidden is padded 6->8; padded rows/cols stay exactly zero so they never leak."""
    F = input_size

    def rows(w, g):                       # PyTorch gate order: i, f, g, o
        return w[g * H:(g + 1) * H]

    b_f = p["bih_f"] + p["bhh_f"]
    b_r = p["bih_r"] + p["bhh_r"]

    w_z = jnp.zeros((NZ, T * F), jnp.float32)
    b_z = jnp.zeros((NZ, 1), jnp.float32)
    # step-0 block: gates [i, g, o] (forget gate is dead because c_prev == 0)
    for slot, g in enumerate((0, 2, 3)):
        rf, rr = slot * DW, slot * DW + HP
        w_z = w_z.at[rf:rf + H, 0:F].set(rows(p["wih_f"], g))
        w_z = w_z.at[rr:rr + H, 2 * F:3 * F].set(rows(p["wih_r"], g))
        b_z = b_z.at[rf:rf + H, 0].set(rows(b_f, g))
        b_z = b_z.at[rr:rr + H, 0].set(rows(b_r, g))
    # step-1 block: gates [i, f, g, o], both directions read x[:,1,:]
    for slot, g in enumerate((0, 1, 2, 3)):
        rf, rr = 3 * DW + slot * DW, 3 * DW + slot * DW + HP
        w_z = w_z.at[rf:rf + H, F:2 * F].set(rows(p["wih_f"], g))
        w_z = w_z.at[rr:rr + H, F:2 * F].set(rows(p["wih_r"], g))
        b_z = b_z.at[rf:rf + H, 0].set(rows(b_f, g))
        b_z = b_z.at[rr:rr + H, 0].set(rows(b_r, g))

    w_hh = jnp.zeros((4 * DW, DW), jnp.float32)
    for slot, g in enumerate((0, 1, 2, 3)):
        w_hh = w_hh.at[slot * DW:slot * DW + H, 0:H].set(rows(p["whh_f"], g))
        w_hh = w_hh.at[slot * DW + HP:slot * DW + HP + H, HP:HP + H].set(rows(p["whh_r"], g))

    # torch's stack/transpose/reshape interleaves [f0,b0,f1,b1,...]: even columns of wfc
    # multiply the forward hidden, odd columns the backward one.
    wfc_fwd = p["wfc"][:, 0::2]
    wfc_bwd = p["wfc"][:, 1::2]

    w_out = jnp.zeros((2 * NOUT, DW), jnp.float32)
    w_out = w_out.at[HP:HP + H, 0:H].set(wfc_fwd)                           # mid  <- h_f0
    w_out = w_out.at[NOUT:NOUT + H, HP:HP + H].set(p["whead"])              # head <- h_r1
    w_out = w_out.at[NOUT + HP:NOUT + HP + H, HP:HP + H].set(wfc_bwd)       # mid  <- h_r1
    w_out = w_out.at[NOUT + 2 * HP:NOUT + 2 * HP + H, 0:H].set(p["wtail"])  # tail <- h_f1

    b_out = jnp.zeros((NOUT, 1), jnp.float32)
    b_out = b_out.at[0:H, 0].set(p["bhead"])
    b_out = b_out.at[HP:HP + H, 0].set(p["bfc"])
    b_out = b_out.at[2 * HP:2 * HP + H, 0].set(p["btail"])
    return w_z, b_z, w_hh, w_out, b_out


def reference_forward(x, p):
    """Pure-JAX transcription of LstmRNN.forward (seq_len == 3, full-length seqs)."""
    B = x.shape[0]

    def lstm(seq, w_ih, w_hh, b_ih, b_hh):
        h = jnp.zeros((B, H), jnp.float32)
        c = jnp.zeros((B, H), jnp.float32)
        hs = []
        for t in range(T):
            g = seq[:, t, :] @ w_ih.T + h @ w_hh.T + b_ih + b_hh
            i = jax.nn.sigmoid(g[:, 0:H])
            f = jax.nn.sigmoid(g[:, H:2 * H])
            gg = jnp.tanh(g[:, 2 * H:3 * H])
            o = jax.nn.sigmoid(g[:, 3 * H:4 * H])
            c = f * c + i * gg
            h = o * jnp.tanh(c)
            hs.append(h)
        return jnp.stack(hs, axis=1)                          # (B, T, H)

    xf = lstm(x, p["wih_f"], p["whh_f"], p["bih_f"], p["bhh_f"])
    xr = lstm(x[:, ::-1, :], p["wih_r"], p["whh_r"], p["bih_r"], p["bhh_r"])

    fwd = jnp.transpose(xf, (1, 0, 2))                        # forward_to_stack_x
    bwd = jnp.transpose(xr, (1, 0, 2))                        # backward_to_stack_x
    Tm1 = T - 1                                               # torch's `T` (== 2)

    fwd_stack = jnp.transpose(fwd[0:Tm1 - 1], (1, 0, 2))      # (B, 1, H)
    bwd_stack = jnp.transpose(bwd[1:Tm1], (1, 0, 2))          # (B, 1, H)
    head = bwd[1]
    tail = fwd[Tm1 - 1]

    xrx = jnp.stack([fwd_stack, bwd_stack], axis=2)           # (B, 1, 2, H)
    xrx = jnp.transpose(xrx, (0, 1, 3, 2)).reshape(B, 1, 2 * H)
    mid = jax.nn.sigmoid(xrx @ p["wfc"].T + p["bfc"])         # (B, 1, 6)
    head = jax.nn.sigmoid(head @ p["whead"].T + p["bhead"]).reshape(B, 1, H)
    tail = jax.nn.sigmoid(tail @ p["wtail"].T + p["btail"]).reshape(B, 1, H)
    return jnp.stack([head, mid, tail], axis=1).reshape(B, 3, H)


if __name__ == "__main__":
    key = jax.random.PRNGKey(0)
    kx, kp, kx2 = jax.random.split(key, 3)

    B, F = 8, 8                        # batch=8, input_size=8, seq=3, hidden=6
    x = jax.random.normal(kx, (B, T, F), jnp.float32)
    xTimestampSizes = [T] * B          # full-length sequences -> pack/pad are identities

    params = init_torch_params(kp, F)
    packed = pack_params(params, F)

    out = jax.block_until_ready(lstm_rnn_forward(x, packed))
    ref = reference_forward(x, params)
    assert out.shape == (B, 3, 6)
    assert jnp.allclose(out, ref, atol=1e-4, rtol=1e-4), \
        float(jnp.max(jnp.abs(out - ref)))

    # Second run: exercises batch padding + a multi-step "parallel" grid (2 tiles).
    B2 = 200
    x2 = jax.random.normal(kx2, (B2, T, F), jnp.float32)
    out2 = jax.block_until_ready(lstm_rnn_forward(x2, packed, block_b=128))
    ref2 = reference_forward(x2, params)
    assert out2.shape == (B2, 3, 6)
    assert jnp.allclose(out2, ref2, atol=1e-4, rtol=1e-4), \
        float(jnp.max(jnp.abs(out2 - ref2)))

    print("KERNEL_OK")
</pallas_src>

<mosaic_0001>
module attributes {stable_mosaic.version = 11 : i64} {
  func.func @_lstm_rnn_kernel(%arg0: i32, %arg1: memref<128x24xf32, #tpu.memory_space<vmem>>, %arg2: memref<112x24xf32, #tpu.memory_space<vmem>>, %arg3: memref<112x1xf32, #tpu.memory_space<vmem>>, %arg4: memref<64x16xf32, #tpu.memory_space<vmem>>, %arg5: memref<48x16xf32, #tpu.memory_space<vmem>>, %arg6: memref<24x1xf32, #tpu.memory_space<vmem>>, %arg7: memref<24x128xf32, #tpu.memory_space<vmem>>) attributes {dimension_semantics = [#tpu.dimension_semantics<parallel>], iteration_bounds = array<i64: 1>, scalar_prefetch = 0 : i64, scratch_operands = 0 : i64, tpu.core_type = #tpu.core_type<tc>, window_params = [{transform_indices = @transform_0, window_bounds = array<i64: 128, 24>}, {pipeline_mode = #tpu.pipeline_mode<synchronous>, transform_indices = @transform_1, window_bounds = array<i64: 112, 24>}, {pipeline_mode = #tpu.pipeline_mode<synchronous>, transform_indices = @transform_2, window_bounds = array<i64: 112, 1>}, {pipeline_mode = #tpu.pipeline_mode<synchronous>, transform_indices = @transform_3, window_bounds = array<i64: 64, 16>}, {pipeline_mode = #tpu.pipeline_mode<synchronous>, transform_indices = @transform_4, window_bounds = array<i64: 48, 16>}, {pipeline_mode = #tpu.pipeline_mode<synchronous>, transform_indices = @transform_5, window_bounds = array<i64: 24, 1>}, {transform_indices = @transform_6, window_bounds = array<i64: 24, 128>}]} {
    %c0 = arith.constant 0 : index
    %c0_0 = arith.constant 0 : index
    %0 = vector.load %arg2[%c0, %c0_0] : memref<112x24xf32, #tpu.memory_space<vmem>>, vector<112x24xf32>
    %c0_1 = arith.constant 0 : index
    %c0_2 = arith.constant 0 : index
    %1 = vector.load %arg1[%c0_1, %c0_2] : memref<128x24xf32, #tpu.memory_space<vmem>>, vector<128x24xf32>
    %cst = arith.constant dense<0.000000e+00> : vector<112x128xf32>
    %2 = tpu.matmul %0, %1, %cst {dimension_numbers = #tpu.dot_dimension_numbers<[1], [1], [0], [0], [0, 0, 1, 0], [], []>} : vector<112x24xf32>, vector<128x24xf32>, vector<112x128xf32> -> vector<112x128xf32>
    %c0_3 = arith.constant 0 : index
    %c0_4 = arith.constant 0 : index
    %3 = vector.load %arg3[%c0_3, %c0_4] : memref<112x1xf32, #tpu.memory_space<vmem>>, vector<112x1xf32>
    %4 = vector.broadcast %3 : vector<112x1xf32> to vector<112x128xf32>
    %5 = arith.addf %2, %4 : vector<112x128xf32>
    %6 = vector.extract_strided_slice %5 {offsets = [0, 0], sizes = [16, 128], strides = [1, 1]} : vector<112x128xf32> to vector<16x128xf32>
    %cst_5 = arith.constant 5.000000e-01 : f32
    %7 = vector.broadcast %cst_5 : f32 to vector<16x128xf32>
    %8 = arith.mulf %7, %6 : vector<16x128xf32>
    %9 = math.tanh %8 : vector<16x128xf32>
    %cst_6 = arith.constant 5.000000e-01 : f32
    %10 = vector.broadcast %cst_6 : f32 to vector<16x128xf32>
    %11 = arith.mulf %10, %9 : vector<16x128xf32>
    %cst_7 = arith.constant 5.000000e-01 : f32
    %12 = vector.broadcast %cst_7 : f32 to vector<16x128xf32>
    %13 = arith.addf %11, %12 : vector<16x128xf32>
    %14 = vector.extract_strided_slice %5 {offsets = [16, 0], sizes = [16, 128], strides = [1, 1]} : vector<112x128xf32> to vector<16x128xf32>
    %15 = math.tanh %14 : vector<16x128xf32>
    %16 = vector.extract_strided_slice %5 {offsets = [32, 0], sizes = [16, 128], strides = [1, 1]} : vector<112x128xf32> to vector<16x128xf32>
    %cst_8 = arith.constant 5.000000e-01 : f32
    %17 = vector.broadcast %cst_8 : f32 to vector<16x128xf32>
    %18 = arith.mulf %17, %16 : vector<16x128xf32>
    %19 = math.tanh %18 : vector<16x128xf32>
    %cst_9 = arith.constant 5.000000e-01 : f32
    %20 = vector.broadcast %cst_9 : f32 to vector<16x128xf32>
    %21 = arith.mulf %20, %19 : vector<16x128xf32>
    %cst_10 = arith.constant 5.000000e-01 : f32
    %22 = vector.broadcast %cst_10 : f32 to vector<16x128xf32>
    %23 = arith.addf %21, %22 : vector<16x128xf32>
    %24 = arith.mulf %13, %15 : vector<16x128xf32>
    %25 = math.tanh %24 : vector<16x128xf32>
    %26 = arith.mulf %23, %25 : vector<16x128xf32>
    %27 = vector.extract_strided_slice %5 {offsets = [48, 0], sizes = [64, 128], strides = [1, 1]} : vector<112x128xf32> to vector<64x128xf32>
    %c0_11 = arith.constant 0 : index
    %c0_12 = arith.constant 0 : index
    %28 = vector.load %arg4[%c0_11, %c0_12] : memref<64x16xf32, #tpu.memory_space<vmem>>, vector<64x16xf32>
    %cst_13 = arith.constant dense<0.000000e+00> : vector<64x128xf32>
    %29 = tpu.matmul %28, %26, %cst_13 {dimension_numbers = #tpu.dot_dimension_numbers<[1], [0], [0], [1], [0, 0, 1, 1], [], []>} : vector<64x16xf32>, vector<16x128xf32>, vector<64x128xf32> -> vector<64x128xf32>
    %30 = arith.addf %27, %29 : vector<64x128xf32>
    %31 = vector.extract_strided_slice %30 {offsets = [0, 0], sizes = [16, 128], strides = [1, 1]} : vector<64x128xf32> to vector<16x128xf32>
    %cst_14 = arith.constant 5.000000e-01 : f32
    %32 = vector.broadcast %cst_14 : f32 to vector<16x128xf32>
    %33 = arith.mulf %32, %31 : vector<16x128xf32>
    %34 = math.tanh %33 : vector<16x128xf32>
    %cst_15 = arith.constant 5.000000e-01 : f32
    %35 = vector.broadcast %cst_15 : f32 to vector<16x128xf32>
    %36 = arith.mulf %35, %34 : vector<16x128xf32>
    %cst_16 = arith.constant 5.000000e-01 : f32
    %37 = vector.broadcast %cst_16 : f32 to vector<16x128xf32>
    %38 = arith.addf %36, %37 : vector<16x128xf32>
    %39 = vector.extract_strided_slice %30 {offsets = [16, 0], sizes = [16, 128], strides = [1, 1]} : vector<64x128xf32> to vector<16x128xf32>
    %cst_17 = arith.constant 5.000000e-01 : f32
    %40 = vector.broadcast %cst_17 : f32 to vector<16x128xf32>
    %41 = arith.mulf %40, %39 : vector<16x128xf32>
    %42 = math.tanh %41 : vector<16x128xf32>
    %cst_18 = arith.constant 5.000000e-01 : f32
    %43 = vector.broadcast %cst_18 : f32 to vector<16x128xf32>
    %44 = arith.mulf %43, %42 : vector<16x128xf32>
    %cst_19 = arith.constant 5.000000e-01 : f32
    %45 = vector.broadcast %cst_19 : f32 to vector<16x128xf32>
    %46 = arith.addf %44, %45 : vector<16x128xf32>
    %47 = vector.extract_strided_slice %30 {offsets = [32, 0], sizes = [16, 128], strides = [1, 1]} : vector<64x128xf32> to vector<16x128xf32>
    %48 = math.tanh %47 : vector<16x128xf32>
    %49 = vector.extract_strided_slice %30 {offsets = [48, 0], sizes = [16, 128], strides = [1, 1]} : vector<64x128xf32> to vector<16x128xf32>
    %cst_20 = arith.constant 5.000000e-01 : f32
    %50 = vector.broadcast %cst_20 : f32 to vector<16x128xf32>
    %51 = arith.mulf %50, %49 : vector<16x128xf32>
    %52 = math.tanh %51 : vector<16x128xf32>
    %cst_21 = arith.constant 5.000000e-01 : f32
    %53 = vector.broadcast %cst_21 : f32 to vector<16x128xf32>
    %54 = arith.mulf %53, %52 : vector<16x128xf32>
    %cst_22 = arith.constant 5.000000e-01 : f32
    %55 = vector.broadcast %cst_22 : f32 to vector<16x128xf32>
    %56 = arith.addf %54, %55 : vector<16x128xf32>
    %57 = arith.mulf %46, %24 : vector<16x128xf32>
    %58 = arith.mulf %38, %48 : vector<16x128xf32>
    %59 = arith.addf %57, %58 : vector<16x128xf32>
    %60 = math.tanh %59 : vector<16x128xf32>
    %61 = arith.mulf %56, %60 : vector<16x128xf32>
    %c0_23 = arith.constant 0 : index
    %c0_24 = arith.constant 0 : index
    %62 = vector.load %arg5[%c0_23, %c0_24] : memref<48x16xf32, #tpu.memory_space<vmem>>, vector<48x16xf32>
    %63 = vector.extract_strided_slice %62 {offsets = [0, 0], sizes = [24, 16], strides = [1, 1]} : vector<48x16xf32> to vector<24x16xf32>
    %cst_25 = arith.constant dense<0.000000e+00> : vector<24x128xf32>
    %64 = tpu.matmul %63, %26, %cst_25 {dimension_numbers = #tpu.dot_dimension_numbers<[1], [0], [0], [1], [0, 0, 1, 1], [], []>} : vector<24x16xf32>, vector<16x128xf32>, vector<24x128xf32> -> vector<24x128xf32>
    %65 = vector.extract_strided_slice %62 {offsets = [24, 0], sizes = [24, 16], strides = [1, 1]} : vector<48x16xf32> to vector<24x16xf32>
    %cst_26 = arith.constant dense<0.000000e+00> : vector<24x128xf32>
    %66 = tpu.matmul %65, %61, %cst_26 {dimension_numbers = #tpu.dot_dimension_numbers<[1], [0], [0], [1], [0, 0, 1, 1], [], []>} : vector<24x16xf32>, vector<16x128xf32>, vector<24x128xf32> -> vector<24x128xf32>
    %67 = arith.addf %64, %66 : vector<24x128xf32>
    %c0_27 = arith.constant 0 : index
    %c0_28 = arith.constant 0 : index
    %68 = vector.load %arg6[%c0_27, %c0_28] : memref<24x1xf32, #tpu.memory_space<vmem>>, vector<24x1xf32>
    %69 = vector.broadcast %68 : vector<24x1xf32> to vector<24x128xf32>
    %70 = arith.addf %67, %69 : vector<24x128xf32>
    %cst_29 = arith.constant 5.000000e-01 : f32
    %71 = vector.broadcast %cst_29 : f32 to vector<24x128xf32>
    %72 = arith.mulf %71, %70 : vector<24x128xf32>
    %73 = math.tanh %72 : vector<24x128xf32>
    %cst_30 = arith.constant 5.000000e-01 : f32
    %74 = vector.broadcast %cst_30 : f32 to vector<24x128xf32>
    %75 = arith.mulf %74, %73 : vector<24x128xf32>
    %cst_31 = arith.constant 5.000000e-01 : f32
    %76 = vector.broadcast %cst_31 : f32 to vector<24x128xf32>
    %77 = arith.addf %75, %76 : vector<24x128xf32>
    %c0_32 = arith.constant 0 : index
    %c0_33 = arith.constant 0 : index
    %78 = vector.load %arg7[%c0_32, %c0_33] : memref<24x128xf32, #tpu.memory_space<vmem>>, vector<24x128xf32>
    tpu.vector_store %arg7[%c0_32, %c0_33], %77 {strides = array<i32>} : memref<24x128xf32, #tpu.memory_space<vmem>>, vector<24x128xf32>,
    return
  }
  func.func @transform_0(%arg0: i32) -> (i32, i32) {
    %c0_i32 = arith.constant 0 : i32
    %c0_i32_0 = arith.constant 0 : i32
    return %arg0, %c0_i32 : i32, i32
  }
  func.func @transform_1(%arg0: i32) -> (i32, i32) {
    %c0_i32 = arith.constant 0 : i32
    %c0_i32_0 = arith.constant 0 : i32
    %c0_i32_1 = arith.constant 0 : i32
    return %c0_i32, %c0_i32_0 : i32, i32
  }
  func.func @transform_2(%arg0: i32) -> (i32, i32) {
    %c0_i32 = arith.constant 0 : i32
    %c0_i32_0 = arith.constant 0 : i32
    %c0_i32_1 = arith.constant 0 : i32
    return %c0_i32, %c0_i32_0 : i32, i32
  }
  func.func @transform_3(%arg0: i32) -> (i32, i32) {
    %c0_i32 = arith.constant 0 : i32
    %c0_i32_0 = arith.constant 0 : i32
    %c0_i32_1 = arith.constant 0 : i32
    return %c0_i32, %c0_i32_0 : i32, i32
  }
  func.func @transform_4(%arg0: i32) -> (i32, i32) {
    %c0_i32 = arith.constant 0 : i32
    %c0_i32_0 = arith.constant 0 : i32
    %c0_i32_1 = arith.constant 0 : i32
    return %c0_i32, %c0_i32_0 : i32, i32
  }
  func.func @transform_5(%arg0: i32) -> (i32, i32) {
    %c0_i32 = arith.constant 0 : i32
    %c0_i32_0 = arith.constant 0 : i32
    %c0_i32_1 = arith.constant 0 : i32
    return %c0_i32, %c0_i32_0 : i32, i32
  }
  func.func @transform_6(%arg0: i32) -> (i32, i32) {
    %c0_i32 = arith.constant 0 : i32
    %c0_i32_0 = arith.constant 0 : i32
    return %c0_i32, %arg0 : i32, i32
  }
}

</mosaic_0001>

<bundles_post_ra>
// kernel: tpu_custom_call.1
= control target key start
LH: loop header
LB: loop body
LE: loop exit
PB: predicated region body
PF: predicated region fallthrough
CT: control target
= control target key end

     0   :  { %vm138_vm0 = vcmask 195584   ;;  %s1020_s0 = inlined_call_operand.vmem [shape: f32[128,24], index: 0, kind: input, shape index: {}]   ;;  %s1021_s1 = inlined_call_operand.vmem [shape: f32[112,24], index: 1, kind: input, shape index: {}]   ;;  %s1022_s2 = inlined_call_operand.vmem [shape: f32[112,1], index: 2, kind: input, shape index: {}]   ;;  %s1023_s3 = inlined_call_operand.vmem [shape: f32[64,16], index: 3, kind: input, shape index: {}]   ;;  %s1024_s4 = inlined_call_operand.vmem [shape: f32[48,16], index: 4, kind: input, shape index: {}]   ;;  %s1025_s5 = inlined_call_operand.vmem [shape: f32[24,1], index: 5, kind: input, shape index: {}]   ;;  %s1026_s6 = inlined_call_operand.hbm [shape: f32[24,128], index: 6, kind: output, shape index: {}]  }
   0x1   :  { %v53_v0 = vld [vmem:[%s1020_s0 + $0x78] sm:$0xff]  ;;  %v52_v1 = vld [vmem:[%s1020_s0 + $0x70] sm:$0xff] }
   0x2   :  { %560 = vmatpush.xpose.msk.msra.mxu0 %vm138_vm0, %v53_v0  ;;  %604 = vmatpush.xpose.msk.msra.mxu2 %vm138_vm0, %v53_v0 }
   0x3   :  { %605 = vmatpush.xpose.msk.msra.mxu3 %vm138_vm0, %v53_v0 }
   0x4   :  { %11 = vsyncpa [#allocation3], 0  ;;  %v51_v2 = vld [vmem:[%s1020_s0 + $0x68] sm:$0xff]  ;;  %v50_v3 = vld [vmem:[%s1020_s0 + $0x60] sm:$0xff]  ;;  %v711_v6 = vmov 0   ;;  %vm320_vm1 = vcmask 130048  }
   0x5   :  { %v49_v4 = vld [vmem:[%s1020_s0 + $0x58] sm:$0xff]  ;;  %v55_v5 = vld [vmem:[%s1022_s2 + $0x8] sm:$0xff]  ;;  %640 = vset.pattern.permute.xlu0 %v711_v6  ;;  %641 = vset.pattern.permute.xlu1 %v711_v6  ;;  %v48_v7 = vld [vmem:[%s1020_s0 + $0x50] sm:$0xff]  ;;  %s548_s16 = sshll.u32 %s1026_s6, 4  ;;  %s713_s17 = smov 128   ;;  %s549_s16 = int_to_ptr.hbm [resolvable:$true] %s548_s16 }
   0x6   :  { %561 = vmatpush.xpose.msk.msra.mxu0 %vm138_vm0, %v52_v1  ;;  %606 = vmatpush.xpose.msk.msra.mxu2 %vm138_vm0, %v52_v1  ;;  %v57_v8 = vld [vmem:[%s1022_s2 + $0x18] sm:$0xff]  ;;  %v47_v9 = vld [vmem:[%s1020_s0 + $0x48] sm:$0xff]  ;;  %v54_v10 = vld [vmem:[%s1022_s2] sm:$0xff]  ;;  %s714_s18 = smov 8  }
   0x7   :  { %607 = vmatpush.xpose.msk.msra.mxu3 %vm138_vm0, %v52_v1  ;;  %75 = vperm.xlu0 %640, %v55_v5   ;;  %v46_v11 = vld [vmem:[%s1020_s0 + $0x40] sm:$0xff]  ;;  %v56_v12 = vld [vmem:[%s1022_s2 + $0x10] sm:$0xff]  ;;  %v45_v13 = vld [vmem:[%s1020_s0 + $0x38] sm:$0xff] }
   0x8   :  { %642 = vset.pattern.permute.xlu2 %v711_v6  ;;  %85 = vperm.xlu1 %641, %v57_v8   ;;  %v61_v14 = vld [vmem:[%s1022_s2 + $0x38] sm:$0xff]  ;;  %v63_v15 = vld [vmem:[%s1022_s2 + $0x48] sm:$0xff]  ;;  %v44_v16 = vld [vmem:[%s1020_s0 + $0x30] sm:$0xff] }
   0x9   :  { %v62_v17 = vld [vmem:[%s1022_s2 + $0x40] sm:$0xff]  ;;  %v43_v18 = vld [vmem:[%s1020_s0 + $0x28] sm:$0xff]  ;;  %v65_v19 = vld [vmem:[%s1022_s2 + $0x58] sm:$0xff] }
   0xa   :  { %562 = vmatpush.xpose.msk.msra.mxu0 %vm138_vm0, %v51_v2  ;;  %608 = vmatpush.xpose.msk.msra.mxu2 %vm138_vm0, %v51_v2  ;;  %v42_v20 = vld [vmem:[%s1020_s0 + $0x20] sm:$0xff]  ;;  %v67_v21 = vld [vmem:[%s1022_s2 + $0x68] sm:$0xff]  ;;  %v41_v22 = vld [vmem:[%s1020_s0 + $0x18] sm:$0xff] }
   0xb   :  { %609 = vmatpush.xpose.msk.msra.mxu3 %vm138_vm0, %v51_v2  ;;  %v66_v23 = vld [vmem:[%s1022_s2 + $0x60] sm:$0xff]  ;;  %v59_v24 = vld [vmem:[%s1022_s2 + $0x28] sm:$0xff]  ;;  %v40_v25 = vld [vmem:[%s1020_s0 + $0x10] sm:$0xff] }
   0xc   :  { %95 = vperm.xlu2 %642, %v59_v24   ;;  %v507_v26 = vld [vmem:[%s1025_s5 + $0x8] sm:$0xff]  ;;  %v508_v28 = vld [vmem:[%s1025_s5 + $0x10] sm:$0xff]  ;;  %v58_v29 = vld [vmem:[%s1022_s2 + $0x20] sm:$0xff] }
   0xd   :  { %v39_v27 = vld [vmem:[%s1020_s0 + $0x8] sm:$0xff]  ;;  %v38_v30 = vld [vmem:[%s1020_s0] sm:$0xff]  ;;  %v31_v33 = vld [vmem:[%s1021_s1 + $0x38] sm:$0xff] }
   0xe   :  { %563 = vmatpush.xpose.msk.msra.mxu0 %vm138_vm0, %v50_v3  ;;  %610 = vmatpush.xpose.msk.msra.mxu2 %vm138_vm0, %v50_v3  ;;  %v24_v31 = vld [vmem:[%s1021_s1] sm:$0xff]  ;;  %v60_v34 = vld [vmem:[%s1022_s2 + $0x30] sm:$0xff]  ;;  %v25_v35 = vld [vmem:[%s1021_s1 + $0x8] sm:$0xff] }
   0xf   :  { %611 = vmatpush.xpose.msk.msra.mxu3 %vm138_vm0, %v50_v3  ;;  %70 = vperm.xlu0 %640, %v54_v10   ;;  %v28_v32 = vld [vmem:[%s1021_s1 + $0x20] sm:$0xff]  ;;  %v29_v36 = vld [vmem:[%s1021_s1 + $0x28] sm:$0xff]  ;;  %v64_v38 = vld [vmem:[%s1022_s2 + $0x50] sm:$0xff] }
  0x10   :  { %80 = vperm.xlu1 %641, %v56_v12   ;;  %v32_v37 = vld [vmem:[%s1021_s1 + $0x40] sm:$0xff]  ;;  %v26_v39 = vld [vmem:[%s1021_s1 + $0x10] sm:$0xff]  ;;  %v33_v41 = vld [vmem:[%s1021_s1 + $0x48] sm:$0xff] }
  0x11   :  { %v30_v40 = vld [vmem:[%s1021_s1 + $0x30] sm:$0xff]  ;;  %v506_v42 = vld [vmem:[%s1025_s5] sm:$0xff]  ;;  %v27_v43 = vld [vmem:[%s1021_s1 + $0x18] sm:$0xff] }
  0x12   :  { %564 = vmatpush.xpose.msk.msra.mxu0 %vm138_vm0, %v49_v4  ;;  %612 = vmatpush.xpose.msk.msra.mxu2 %vm138_vm0, %v49_v4  ;;  %v34_v44 = vld [vmem:[%s1021_s1 + $0x50] sm:$0xff]  ;;  %v35_v45 = vld [vmem:[%s1021_s1 + $0x58] sm:$0xff]  ;;  %v36_v46 = vld [vmem:[%s1021_s1 + $0x60] sm:$0xff] }
  0x13   :  { %613 = vmatpush.xpose.msk.msra.mxu3 %vm138_vm0, %v49_v4  ;;  %v37_v47 = vld [vmem:[%s1021_s1 + $0x68] sm:$0xff] }
  0x14   :  { %90 = vperm.xlu2 %642, %v58_v29   ;;  %v315_v29 = vld [vmem:[%s1023_s3 + $0x18] sm:$0xff] }
  0x16   :  { %565 = vmatpush.xpose.msk.msra.mxu0 %vm138_vm0, %v48_v7  ;;  %614 = vmatpush.xpose.msk.msra.mxu2 %vm138_vm0, %v48_v7 }
  0x17   :  { %615 = vmatpush.xpose.msk.msra.mxu3 %vm138_vm0, %v48_v7  ;;  %105 = vperm.xlu0 %640, %v61_v14  }
  0x18   :  { %115 = vperm.xlu1 %641, %v63_v15  }
  0x1a   :  { %566 = vmatpush.xpose.msk.msra.mxu0 %vm138_vm0, %v47_v9  ;;  %616 = vmatpush.xpose.msk.msra.mxu2 %vm138_vm0, %v47_v9 }
  0x1b   :  { %617 = vmatpush.xpose.msk.msra.mxu3 %vm138_vm0, %v47_v9 }
  0x1c   :  { %100 = vperm.xlu2 %642, %v60_v34  }
  0x1e   :  { %567 = vmatpush.xpose.msk.msra.mxu0 %vm138_vm0, %v46_v11  ;;  %618 = vmatpush.xpose.msk.msra.mxu2 %vm138_vm0, %v46_v11 }
  0x1f   :  { %619 = vmatpush.xpose.msk.msra.mxu3 %vm138_vm0, %v46_v11  ;;  %110 = vperm.xlu0 %640, %v62_v17  }
  0x20   :  { %125 = vperm.xlu1 %641, %v65_v19  }
  0x22   :  { %568 = vmatpush.xpose.msk.msra.mxu0 %vm138_vm0, %v45_v13  ;;  %620 = vmatpush.xpose.msk.msra.mxu2 %vm138_vm0, %v45_v13 }
  0x23   :  { %621 = vmatpush.xpose.msk.msra.mxu3 %vm138_vm0, %v45_v13 }
  0x24   :  { %120 = vperm.xlu2 %642, %v64_v38  }
  0x26   :  { %569 = vmatpush.xpose.msk.msra.mxu0 %vm138_vm0, %v44_v16  ;;  %622 = vmatpush.xpose.msk.msra.mxu2 %vm138_vm0, %v44_v16 }
  0x27   :  { %623 = vmatpush.xpose.msk.msra.mxu3 %vm138_vm0, %v44_v16  ;;  %135 = vperm.xlu0 %640, %v67_v21  }
  0x28   :  { %130 = vperm.xlu1 %641, %v66_v23  }
  0x2a   :  { %570 = vmatpush.xpose.msk.msra.mxu0 %vm138_vm0, %v43_v18  ;;  %624 = vmatpush.xpose.msk.msra.mxu2 %vm138_vm0, %v43_v18 }
  0x2b   :  { %625 = vmatpush.xpose.msk.msra.mxu3 %vm138_vm0, %v43_v18 }
  0x2c   :  { %511 = vperm.xlu2 %642, %v506_v42  }
  0x2e   :  { %571 = vmatpush.xpose.msk.msra.mxu0 %vm138_vm0, %v42_v20  ;;  %626 = vmatpush.xpose.msk.msra.mxu2 %vm138_vm0, %v42_v20 }
  0x2f   :  { %627 = vmatpush.xpose.msk.msra.mxu3 %vm138_vm0, %v42_v20  ;;  %516 = vperm.xlu0 %640, %v507_v26   ;;  %v312_v26 = vld [vmem:[%s1023_s3] sm:$0xff] }
  0x30   :  { %521 = vperm.xlu1 %641, %v508_v28   ;;  %v314_v28 = vld [vmem:[%s1023_s3 + $0x10] sm:$0xff] }
  0x32   :  { %572 = vmatpush.xpose.msk.msra.mxu0 %vm138_vm0, %v41_v22  ;;  %628 = vmatpush.xpose.msk.msra.mxu2 %vm138_vm0, %v41_v22 }
  0x33   :  { %629 = vmatpush.xpose.msk.msra.mxu3 %vm138_vm0, %v41_v22 }
  0x36   :  { %573 = vmatpush.xpose.msk.msra.mxu0 %vm138_vm0, %v40_v25  ;;  %630 = vmatpush.xpose.msk.msra.mxu2 %vm138_vm0, %v40_v25 }
  0x37   :  { %631 = vmatpush.xpose.msk.msra.mxu3 %vm138_vm0, %v40_v25 }
  0x3a   :  { %574 = vmatpush.xpose.msk.msra.mxu0 %vm138_vm0, %v39_v27  ;;  %632 = vmatpush.xpose.msk.msra.mxu2 %vm138_vm0, %v39_v27 }
  0x3b   :  { %633 = vmatpush.xpose.msk.msra.mxu3 %vm138_vm0, %v39_v27  ;;  %v313_v27 = vld [vmem:[%s1023_s3 + $0x8] sm:$0xff] }
  0x3e   :  { %575 = vmatpush.xpose.msk.msra.mxu0 %vm138_vm0, %v38_v30  ;;  %634 = vmatpush.xpose.msk.msra.mxu2 %vm138_vm0, %v38_v30 }
  0x3f   :  { %635 = vmatpush.xpose.msk.msra.mxu3 %vm138_vm0, %v38_v30  ;;  %v316_v30 = vld [vmem:[%s1023_s3 + $0x20] sm:$0xff] }
  0x41   :  { %576 = vmatmul.msk.f32.vlgmr.msra.gmra.mxu0 %vm138_vm0, %v24_v31  ;;  %580 = vmatmul.msk.f32.vlgmr.msra.gmra.mxu2 %vm138_vm0, %v28_v32  ;;  %v317_v31 = vld [vmem:[%s1023_s3 + $0x28] sm:$0xff]  ;;  %v318_v32 = vld [vmem:[%s1023_s3 + $0x30] sm:$0xff] }
  0x42   :  { %583 = vmatmul.msk.f32.vlgmr.msra.gmra.mxu3 %vm138_vm0, %v31_v33  ;;  %v319_v33 = vld [vmem:[%s1023_s3 + $0x38] sm:$0xff] }
  0x49   :  { %577 = vmatmul.msk.f32.gmra.mxu0 %vm138_vm0, %v25_v35  ;;  %581 = vmatmul.msk.f32.gmra.mxu2 %vm138_vm0, %v29_v36 }
  0x4a   :  { %584 = vmatmul.msk.f32.gmra.mxu3 %vm138_vm0, %v32_v37 }
  0x51   :  { %578 = vmatmul.msk.f32.gmra.mxu0 %vm138_vm0, %v26_v39  ;;  %582 = vmatmul.msk.f32.gmra.mxu2 %vm138_vm0, %v30_v40 }
  0x52   :  { %585 = vmatmul.msk.f32.gmra.mxu3 %vm138_vm0, %v33_v41 }
  0x59   :  { %579 = vmatmul.msk.f32.gmra.mxu0 %vm138_vm0, %v27_v43 }
  0x5a   :  { %586 = vmatmul.msk.f32.gmra.mxu3 %vm138_vm0, %v34_v44 }
  0x62   :  { %587 = vmatmul.msk.f32.gmra.mxu3 %vm138_vm0, %v35_v45 }
  0x66   :  { %v96_v52 = vpop.permute.xlu2 %95 }
  0x6a   :  { %588 = vmatmul.msk.f32.gmra.mxu3 %vm138_vm0, %v36_v46 }
  0x6e   :  { %v91_v61 = vpop.permute.xlu2 %90 }
  0x72   :  { %589 = vmatmul.msk.f32.gmra.mxu3 %vm138_vm0, %v37_v47 }
  0x76   :  { %v101_v45 = vpop.permute.xlu2 %100 }
  0x79   :  { %v76_v48 = vpop.permute.xlu0 %75 }
  0x7a   :  { %v86_v50 = vpop.permute.xlu1 %85 }
  0x81   :  { %v71_v51 = vpop.permute.xlu0 %70 }
  0x82   :  { %v81_v60 = vpop.permute.xlu1 %80 }
  0x89   :  { %v106_v41 = vpop.permute.xlu0 %105 }
  0x8a   :  { %v116_v43 = vpop.permute.xlu1 %115 }
  0xbe   :  { %v246_v49 = vpop.f32.mrf.mxu0 }
  0xbf   :  { %v247_v53 = vadd.f32 %v246_v49, %v71_v51 }
  0xc1   :  { %v288_v57 = vmul.f32 0.5, %v247_v53 }
  0xc3   :  { %643 = vtanh.f32 %v288_v57 }
  0xc4   :  { %v258_v55 = vpop.f32.mrf.mxu2 }
  0xc5   :  { %v259_v62 = vadd.f32 %v258_v55, %v91_v61  ;;  %v267_v34 = vpop.f32.mrf.mxu3 }
  0xc6   :  { %v249_v54 = vpop.f32.mrf.mxu0  ;;  %v268_v46 = vadd.f32 %v267_v34, %v106_v41 }
  0xc7   :  { %v250_v56 = vadd.f32 %v249_v54, %v76_v48  ;;  %v298_v3 = vmul.f32 0.5, %v259_v62 }
  0xc9   :  { %v289_v58 = vmul.f32 0.5, %v250_v56  ;;  %v644_v2 = vpop.eup %643  ;;  %v126_v56 = vpop.permute.xlu1 %125 }
  0xca   :  { %v292_v7 = vmul.f32 0.5, %v644_v2 }
  0xcb   :  { %645 = vtanh.f32 %v289_v58 }
  0xcc   :  { %v261_v0 = vpop.f32.mrf.mxu2  ;;  %v294_v11 = vadd.f32 0.5, %v292_v7 }
  0xcd   :  { %v262_v1 = vadd.f32 %v261_v0, %v96_v52  ;;  %v270_v36 = vpop.f32.mrf.mxu3 }
  0xce   :  { %v252_v59 = vpop.f32.mrf.mxu0 }
  0xcf   :  { %v253_v63 = vadd.f32 %v252_v59, %v81_v60  ;;  %v299_v4 = vmul.f32 0.5, %v262_v1  ;;  %v121_v1 = vpop.permute.xlu2 %120 }
  0xd1   :  { %647 = vtanh.f32 %v253_v63  ;;  %v646_v6 = vpop.eup %645 }
  0xd2   :  { %649 = vtanh.f32 %v298_v3  ;;  %v293_v10 = vmul.f32 0.5, %v646_v6 }
  0xd4   :  { %v295_v14 = vadd.f32 0.5, %v293_v10  ;;  %v264_v44 = vpop.f32.mrf.mxu2 }
  0xd5   :  { %v273_v38 = vpop.f32.mrf.mxu3  ;;  %v265_v51 = vadd.f32 %v264_v44, %v101_v45 }
  0xd6   :  { %v255_v5 = vpop.f32.mrf.mxu0  ;;  %v274_v47 = vadd.f32 %v273_v38, %v116_v43 }
  0xd7   :  { %v256_v8 = vadd.f32 %v255_v5, %v86_v50  ;;  %v648_v9 = vpop.eup %647  ;;  %v111_v50 = vpop.permute.xlu0 %110 }
  0xd8   :  { %v953_v12 = vmul.f32 %v648_v9, %v294_v11  ;;  %v650_v13 = vpop.eup %649  ;;  %v271_v53 = vadd.f32 %v270_v36, %v111_v50  ;;  %v131_v5 = vpop.permute.xlu1 %130  ;;  %v434_v50 = vld [vmem:[%s1024_s4 + $0x20] sm:$0xff] }
  0xd9   :  { %651 = vtanh.f32 %v256_v8  ;;  %v302_v18 = vmul.f32 0.5, %v650_v13 }
  0xda   :  { %653 = vtanh.f32 %v299_v4  ;;  %v430_v4 = vld [vmem:[%s1024_s4] sm:$0xff] }
  0xdb   :  { %655 = vtanh.f32 %v953_v12  ;;  %v304_v22 = vadd.f32 0.5, %v302_v18 }
  0xdd   :  { %v276_v40 = vpop.f32.mrf.mxu3 }
  0xde   :  { %v277_v2 = vadd.f32 %v276_v40, %v121_v1 }
  0xdf   :  { %v652_v15 = vpop.eup %651 }
  0xe0   :  { %v654_v16 = vpop.eup %653  ;;  %v955_v17 = vmul.f32 %v652_v15, %v295_v14 }
  0xe1   :  { %v303_v19 = vmul.f32 0.5, %v654_v16  ;;  %v656_v20 = vpop.eup %655 }
  0xe2   :  { %657 = vtanh.f32 %v955_v17  ;;  %v310_v25 = vmul.f32 %v656_v20, %v304_v22  ;;  %v431_v22 = vld [vmem:[%s1024_s4 + $0x8] sm:$0xff] }
  0xe3   :  { %v305_v21 = vadd.f32 0.5, %v303_v19 }
  0xe5   :  { %v279_v48 = vpop.f32.mrf.mxu3 }
  0xe6   :  { %v280_v63 = vadd.f32 %v279_v48, %v126_v56 }
  0xe8   :  { %v658_v23 = vpop.eup %657 }
  0xe9   :  { %v311_v24 = vmul.f32 %v658_v23, %v305_v21 }
  0xeb   :  { %359 = vmatpush.msra.mxu1 %v311_v24 }
  0xed   :  { %360 = vmatpush.msra.mxu1 %v310_v25  ;;  %v282_v0 = vpop.f32.mrf.mxu3 }
  0xee   :  { %590 = vmatmul.msk.f32.vlgmr.msra.gmra.mxu1 %vm320_vm1, %v312_v26  ;;  %v283_v8 = vadd.f32 %v282_v0, %v131_v5 }
  0xef   :  { %494 = vmatpush.msrb.mxu1 %v311_v24  ;;  %v136_v24 = vpop.permute.xlu0 %135 }
  0xf1   :  { %495 = vmatpush.msrb.mxu1 %v310_v25 }
  0xf5   :  { %v285_v18 = vpop.f32.mrf.mxu3 }
  0xf6   :  { %591 = vmatmul.msk.f32.gmra.mxu1 %vm320_vm1, %v313_v27  ;;  %v286_v25 = vadd.f32 %v285_v18, %v136_v24 }
  0xfe   :  { %592 = vmatmul.msk.f32.gmra.mxu1 %vm320_vm1, %v314_v28 }
 0x106   :  { %593 = vmatmul.msk.f32.gmra.mxu1 %vm320_vm1, %v315_v29 }
 0x10e   :  { %594 = vmatmul.msk.f32.gmra.mxu1 %vm320_vm1, %v316_v30 }
 0x116   :  { %595 = vmatmul.msk.f32.gmra.mxu1 %vm320_vm1, %v317_v31 }
 0x11e   :  { %596 = vmatmul.msk.f32.gmra.mxu1 %vm320_vm1, %v318_v32 }
 0x126   :  { %597 = vmatmul.msk.f32.gmra.mxu1 %vm320_vm1, %v319_v33 }
 0x12e   :  { %601 = vmatmul.msk.f32.vlgmr.msrb.gmra.mxu1 %vm320_vm1, %v430_v4 }
 0x136   :  { %602 = vmatmul.msk.f32.gmra.mxu1 %vm320_vm1, %v431_v22 }
 0x16b   :  { %v362_v35 = vpop.f32.mrf.mxu1 }
 0x16c   :  { %v386_v55 = vadd.f32 %v362_v35, %v265_v51  ;;  %v435_v51 = vld [vmem:[%s1024_s4 + $0x28] sm:$0xff] }
 0x16e   :  { %v394_v60 = vmul.f32 0.5, %v386_v55  ;;  %v512_v55 = vpop.permute.xlu2 %511 }
 0x173   :  { %v365_v37 = vpop.f32.mrf.mxu1 }
 0x174   :  { %v387_v52 = vadd.f32 %v365_v37, %v268_v46 }
 0x176   :  { %v395_v58 = vmul.f32 0.5, %v387_v52 }
 0x178   :  { %659 = vtanh.f32 %v395_v58 }
 0x17b   :  { %v368_v39 = vpop.f32.mrf.mxu1 }
 0x17c   :  { %v388_v57 = vadd.f32 %v368_v39, %v271_v53  ;;  %v432_v39 = vld [vmem:[%s1024_s4 + $0x10] sm:$0xff] }
 0x17d   :  { %603 = vmatmul.msk.f32.gmra.mxu1 %vm320_vm1, %v432_v39 }
 0x17e   :  { %v402_v61 = vmul.f32 0.5, %v388_v57  ;;  %v660_v7 = vpop.eup %659 }
 0x17f   :  { %v399_v15 = vmul.f32 0.5, %v660_v7 }
 0x181   :  { %v401_v26 = vadd.f32 0.5, %v399_v15 }
 0x183   :  { %v371_v42 = vpop.f32.mrf.mxu1 }
 0x184   :  { %v389_v54 = vadd.f32 %v371_v42, %v274_v47 }
 0x186   :  { %v403_v59 = vmul.f32 0.5, %v389_v54 }
 0x188   :  { %661 = vtanh.f32 %v403_v59 }
 0x189   :  { %663 = vtanh.f32 %v394_v60 }
 0x18a   :  { %665 = vtanh.f32 %v402_v61  ;;  %v517_v61 = vpop.permute.xlu0 %516 }
 0x18b   :  { %v374_v49 = vpop.f32.mrf.mxu1 }
 0x18c   :  { %v390_v6 = vadd.f32 %v374_v49, %v277_v2  ;;  %v433_v49 = vld [vmem:[%s1024_s4 + $0x18] sm:$0xff]  ;;  %s712_s4 = smov [#allocation2]  }
 0x18d   :  { %s546_s0 = sshll.u32 %s712_s4, 4  ;;  %s547_s0 = int_to_ptr.vmem [resolvable:$true] %s546_s0 }
 0x18e   :  { %v662_v9 = vpop.eup %661 }
 0x18f   :  { %v664_v11 = vpop.eup %663  ;;  %v407_v16 = vmul.f32 0.5, %v662_v9 }
 0x190   :  { %v666_v14 = vpop.eup %665  ;;  %v398_v19 = vmul.f32 0.5, %v664_v11 }
 0x191   :  { %v406_v20 = vmul.f32 0.5, %v666_v14  ;;  %v409_v27 = vadd.f32 0.5, %v407_v16 }
 0x192   :  { %v400_v29 = vadd.f32 0.5, %v398_v19 }
 0x193   :  { %v377_v62 = vpop.f32.mrf.mxu1  ;;  %v408_v31 = vadd.f32 0.5, %v406_v20  ;;  %v421_v34 = vmul.f32 %v409_v27, %v955_v17 }
 0x194   :  { %v391_v3 = vadd.f32 %v377_v62, %v280_v63 }
 0x195   :  { %v420_v37 = vmul.f32 %v408_v31, %v953_v12 }
 0x196   :  { %667 = vtanh.f32 %v391_v3 }
 0x197   :  { %669 = vtanh.f32 %v390_v6  ;;  %v522_v6 = vpop.permute.xlu1 %521 }
 0x19b   :  { %v380_v10 = vpop.f32.mrf.mxu1 }
 0x19c   :  { %v392_v13 = vadd.f32 %v380_v10, %v283_v8  ;;  %v668_v23 = vpop.eup %667 }
 0x19d   :  { %v670_v28 = vpop.eup %669  ;;  %v423_v32 = vmul.f32 %v668_v23, %v401_v26 }
 0x19e   :  { %v412_v21 = vmul.f32 0.5, %v392_v13  ;;  %v422_v35 = vmul.f32 %v670_v28, %v400_v29 }
 0x19f   :  { %v425_v38 = vadd.f32 %v423_v32, %v421_v34 }
 0x1a0   :  { %671 = vtanh.f32 %v412_v21  ;;  %v424_v41 = vadd.f32 %v422_v35, %v420_v37 }
 0x1a3   :  { %v383_v30 = vpop.f32.mrf.mxu1 }
 0x1a4   :  { %v393_v33 = vadd.f32 %v383_v30, %v286_v25 }
 0x1a6   :  { %v413_v36 = vmul.f32 0.5, %v393_v33  ;;  %v672_v40 = vpop.eup %671 }
 0x1a7   :  { %v416_v42 = vmul.f32 0.5, %v672_v40 }
 0x1a8   :  { %673 = vtanh.f32 %v413_v36 }
 0x1a9   :  { %675 = vtanh.f32 %v425_v38  ;;  %v418_v45 = vadd.f32 0.5, %v416_v42 }
 0x1aa   :  { %677 = vtanh.f32 %v424_v41 }
 0x1ab   :  { %v497_v52 = vpop.f32.mrf.mxu1 }
 0x1ae   :  { %v674_v43 = vpop.eup %673 }
 0x1af   :  { %v417_v44 = vmul.f32 0.5, %v674_v43  ;;  %v676_v46 = vpop.eup %675 }
 0x1b0   :  { %v678_v12 = vpop.eup %677 }
 0x1b1   :  { %v419_v17 = vadd.f32 0.5, %v417_v44  ;;  %v428_v48 = vmul.f32 %v678_v12, %v418_v45 }
 0x1b3   :  { %v429_v47 = vmul.f32 %v676_v46, %v419_v17  ;;  %v500_v57 = vpop.f32.mrf.mxu1 }
 0x1b5   :  { %459 = vmatpush.msrb.mxu2 %v429_v47 }
 0x1b7   :  { %460 = vmatpush.msrb.mxu2 %v428_v48 }
 0x1b8   :  { %598 = vmatmul.msk.f32.vlgmr.msrb.gmra.mxu2 %vm320_vm1, %v433_v49 }
 0x1c0   :  { %599 = vmatmul.msk.f32.gmra.mxu2 %vm320_vm1, %v434_v50 }
 0x1c8   :  { %600 = vmatmul.msk.f32.gmra.mxu2 %vm320_vm1, %v435_v51 }
 0x1fa   :  { %v503_v2 = vpop.f32.mrf.mxu1 }
 0x23b   :  { %v462_v53 = vpop.f32.mrf.mxu2 }
 0x23c   :  { %v498_v54 = vadd.f32 %v497_v52, %v462_v53 }
 0x23e   :  { %v524_v56 = vadd.f32 %v512_v55, %v498_v54 }
 0x240   :  { %v527_v58 = vmul.f32 0.5, %v524_v56 }
 0x242   :  { %679 = vtanh.f32 %v527_v58 }
 0x243   :  { %v465_v59 = vpop.f32.mrf.mxu2 }
 0x244   :  { %v501_v60 = vadd.f32 %v500_v57, %v465_v59 }
 0x246   :  { %v525_v62 = vadd.f32 %v517_v61, %v501_v60 }
 0x248   :  { %v680_v63 = vpop.eup %679  ;;  %v528_v0 = vmul.f32 0.5, %v525_v62 }
 0x249   :  { %v533_v1 = vmul.f32 0.5, %v680_v63 }
 0x24a   :  { %681 = vtanh.f32 %v528_v0 }
 0x24b   :  { %v536_v3 = vadd.f32 0.5, %v533_v1  ;;  %v468_v4 = vpop.f32.mrf.mxu2 }
 0x24c   :  { %v504_v5 = vadd.f32 %v503_v2, %v468_v4 }
 0x24d   :  { %539 = vst [vmem:[#allocation2] sm:$0xff] %v536_v3 }
 0x24e   :  { %v526_v7 = vadd.f32 %v522_v6, %v504_v5 }
 0x250   :  { %v682_v8 = vpop.eup %681  ;;  %v529_v9 = vmul.f32 0.5, %v526_v7 }
 0x251   :  { %v534_v10 = vmul.f32 0.5, %v682_v8 }
 0x252   :  { %683 = vtanh.f32 %v529_v9 }
 0x253   :  { %v537_v11 = vadd.f32 0.5, %v534_v10 }
 0x255   :  { %540 = vst [vmem:[#allocation2 + $0x8] sm:$0xff] %v537_v11 }
 0x258   :  { %v684_v13 = vpop.eup %683 }
 0x259   :  { %v535_v14 = vmul.f32 0.5, %v684_v13 }
 0x25b   :  { %v538_v15 = vadd.f32 0.5, %v535_v14 }
 0x25d   :  { %541 = vst [vmem:[#allocation2 + $0x10] sm:$0xff] %v538_v15 }
 0x25e   :  { %554 = dma.vmem_to_hbm [thread:$0]  %s547_s0, 384, %s549_s16, [#allocation3], %s713_s17, %s713_s17, %s714_s18  }
 0x25f   :  { %709 = dma.done.wait [#allocation3], 384  }
 0x260   :  { %710 = vsyncadd [#allocation3], 4294966912 }
 0x261   :  { %559 = vsyncpa [#allocation3], 1 }

</bundles_post_ra>
